<compile_context>
chip_gen: v7x
topology: tpu7x:2x2x1
jax: 0.10.0
libtpu: 0.0.40
codegen_flags: <defaults>
</compile_context>

<pallas_src>
import jax
import jax.numpy as jnp
from jax.experimental import pallas as pl
from jax.experimental.pallas import tpu as pltpu

LAYER_DIMS = [41, 128, 64, 32, 16, 8, 1]
N_LAYERS = len(LAYER_DIMS) - 1
IN_PAD = 48  # 41 padded up to a multiple of 8 (sublane-aligned K for layer 0)

# Default batch tile.  2048 is a multiple of 256 (v6e/v7x MXU M tile) and keeps
# the double-buffered bf16 x tiles + f32 activations comfortably inside the
# 32 MiB default scoped-VMEM limit on every generation (incl. 64 MiB v7x).
DEFAULT_BLOCK_B = 2048


def _round_up(x, m):
    return (x + m - 1) // m * m


def mlp_kernel(x_ref, *refs):
    """Fused MLP forward for one batch tile."""
    param_refs = refs[: 2 * N_LAYERS]
    out_ref = refs[2 * N_LAYERS]

    h = x_ref[...]  # (TB, 48) bf16

    # Hidden layers (41->128->64->32->16->8): MXU matmul with f32 accumulate,
    # bias + ReLU in f32, re-quantize to bf16 to feed the next MXU layer.
    for i in range(N_LAYERS - 1):
        w = param_refs[2 * i][...]          # (in, out)  bf16
        b = param_refs[2 * i + 1][...]      # (1, out)   f32, broadcasts over batch
        z = jnp.dot(h, w, preferred_element_type=jnp.float32) + b
        a = jnp.maximum(z, 0.0)             # ReLU (VPU, f32)
        h = a.astype(jnp.bfloat16) if i < N_LAYERS - 2 else a

    # Final Linear(8, 1) + Sigmoid on VPU/XLU instead of the MXU:
    # weight is passed pre-transposed as (1, 8) so it lane-broadcasts.
    w_last = param_refs[2 * (N_LAYERS - 1)][...].astype(jnp.float32)   # (1, 8)
    b_last = param_refs[2 * (N_LAYERS - 1) + 1][...]                   # (1, 1) f32
    z = jnp.sum(h * w_last, axis=-1, keepdims=True) + b_last           # (TB, 1)
    out_ref[...] = jax.nn.sigmoid(z).astype(out_ref.dtype)             # EUP exp


def init_params(key):
    """Deterministic PyTorch-style init: U(-1/sqrt(fan_in), 1/sqrt(fan_in))."""
    params = []
    for i in range(N_LAYERS):
        fan_in, fan_out = LAYER_DIMS[i], LAYER_DIMS[i + 1]
        key, kw, kb = jax.random.split(key, 3)
        bound = 1.0 / (fan_in ** 0.5)
        w = jax.random.uniform(kw, (fan_in, fan_out), jnp.float32, -bound, bound)
        b = jax.random.uniform(kb, (1, fan_out), jnp.float32, -bound, bound)
        params.append((w, b))
    return params


def net_forward(x, params, *, block_b=DEFAULT_BLOCK_B):
    """Pallas-backed forward pass. x: (B, 41) float32 -> (B, 1) float32."""
    B, F = x.shape
    assert F == LAYER_DIMS[0], (F, LAYER_DIMS[0])

    # Batch tile: multiple of 16 (bf16 sublane packing), capped at block_b.
    tb = _round_up(min(block_b, _round_up(B, 16)), 16)
    Bp = _round_up(B, tb)

    # Pad feature dim 41 -> 48 and batch B -> Bp; cast the input stream to bf16.
    xp = jnp.pad(x, ((0, Bp - B), (0, IN_PAD - F))).astype(jnp.bfloat16)

    # Flatten params: weights in bf16 (w1 rows zero-padded to 48, last weight
    # pre-transposed to (1, 8) for the VPU path), biases kept in f32.
    flat = []
    for i, (w, b) in enumerate(params):
        if i == 0:
            w = jnp.pad(w, ((0, IN_PAD - w.shape[0]), (0, 0)))
        if i == N_LAYERS - 1:
            w = w.T  # (1, 8)
        flat.append(w.astype(jnp.bfloat16))
        flat.append(b.astype(jnp.float32))

    grid = (Bp // tb,)

    # x/out tiles walk the batch; weights/biases use constant index maps so
    # they are loaded once and stay resident in VMEM across the grid.
    in_specs = [pl.BlockSpec((tb, IN_PAD), lambda i: (i, 0))]
    in_specs += [pl.BlockSpec(a.shape, lambda i: (0, 0)) for a in flat]
    out_spec = pl.BlockSpec((tb, 1), lambda i: (i, 0))

    out = pl.pallas_call(
        mlp_kernel,
        grid=grid,
        in_specs=in_specs,
        out_specs=out_spec,
        out_shape=jax.ShapeDtypeStruct((Bp, 1), jnp.float32),
        compiler_params=pltpu.CompilerParams(
            dimension_semantics=("parallel",),  # megacore sharding on v7x
        ),
    )(xp, *flat)
    return out[:B]


def net_forward_ref(x, params):
    """Pure-JAX f32 reference for correctness checking."""
    h = x.astype(jnp.float32)
    for i, (w, b) in enumerate(params):
        h = h @ w + b
        h = jnp.maximum(h, 0.0) if i < N_LAYERS - 1 else jax.nn.sigmoid(h)
    return h


if __name__ == "__main__":
    key = jax.random.PRNGKey(0)
    key_x, key_p = jax.random.split(key)

    # Small deterministic test. block_b=16 forces a multi-step batch grid and
    # a padded tail tile (B=40 -> Bp=48, grid=(3,)) to exercise the pipeline.
    B = 40
    x = jax.random.normal(key_x, (B, 41), dtype=jnp.float32)
    params = init_params(key_p)

    out = net_forward(x, params, block_b=16)
    out = jax.block_until_ready(out)

    ref = net_forward_ref(x, params)
    assert out.shape == (B, 1), out.shape
    # bf16 input/weight quantization (f32 accumulation) -> loosened tolerance.
    assert jnp.allclose(out, ref, atol=2e-2, rtol=2e-2), (out, ref)

    print("KERNEL_OK")
</pallas_src>

<mosaic_0001>
module attributes {stable_mosaic.version = 11 : i64} {
  func.func @mlp_kernel(%arg0: i32, %arg1: memref<16x48xbf16, #tpu.memory_space<vmem>>, %arg2: memref<48x128xbf16, #tpu.memory_space<vmem>>, %arg3: memref<1x128xf32, #tpu.memory_space<vmem>>, %arg4: memref<128x64xbf16, #tpu.memory_space<vmem>>, %arg5: memref<1x64xf32, #tpu.memory_space<vmem>>, %arg6: memref<64x32xbf16, #tpu.memory_space<vmem>>, %arg7: memref<1x32xf32, #tpu.memory_space<vmem>>, %arg8: memref<32x16xbf16, #tpu.memory_space<vmem>>, %arg9: memref<1x16xf32, #tpu.memory_space<vmem>>, %arg10: memref<16x8xbf16, #tpu.memory_space<vmem>>, %arg11: memref<1x8xf32, #tpu.memory_space<vmem>>, %arg12: memref<1x8xbf16, #tpu.memory_space<vmem>>, %arg13: memref<1x1xf32, #tpu.memory_space<vmem>>, %arg14: memref<16x1xf32, #tpu.memory_space<vmem>>) attributes {dimension_semantics = [#tpu.dimension_semantics<parallel>], iteration_bounds = array<i64: 3>, scalar_prefetch = 0 : i64, scratch_operands = 0 : i64, tpu.core_type = #tpu.core_type<tc>, window_params = [{transform_indices = @transform_0, window_bounds = array<i64: 16, 48>}, {pipeline_mode = #tpu.pipeline_mode<synchronous>, transform_indices = @transform_1, window_bounds = array<i64: 48, 128>}, {pipeline_mode = #tpu.pipeline_mode<synchronous>, transform_indices = @transform_2, window_bounds = array<i64: 1, 128>}, {pipeline_mode = #tpu.pipeline_mode<synchronous>, transform_indices = @transform_3, window_bounds = array<i64: 128, 64>}, {pipeline_mode = #tpu.pipeline_mode<synchronous>, transform_indices = @transform_4, window_bounds = array<i64: 1, 64>}, {pipeline_mode = #tpu.pipeline_mode<synchronous>, transform_indices = @transform_5, window_bounds = array<i64: 64, 32>}, {pipeline_mode = #tpu.pipeline_mode<synchronous>, transform_indices = @transform_6, window_bounds = array<i64: 1, 32>}, {pipeline_mode = #tpu.pipeline_mode<synchronous>, transform_indices = @transform_7, window_bounds = array<i64: 32, 16>}, {pipeline_mode = #tpu.pipeline_mode<synchronous>, transform_indices = @transform_8, window_bounds = array<i64: 1, 16>}, {pipeline_mode = #tpu.pipeline_mode<synchronous>, transform_indices = @transform_9, window_bounds = array<i64: 16, 8>}, {pipeline_mode = #tpu.pipeline_mode<synchronous>, transform_indices = @transform_10, window_bounds = array<i64: 1, 8>}, {pipeline_mode = #tpu.pipeline_mode<synchronous>, transform_indices = @transform_11, window_bounds = array<i64: 1, 8>}, {pipeline_mode = #tpu.pipeline_mode<synchronous>, transform_indices = @transform_12, window_bounds = array<i64: 1, 1>}, {transform_indices = @transform_13, window_bounds = array<i64: 16, 1>}]} {
    %c0 = arith.constant 0 : index
    %c0_0 = arith.constant 0 : index
    %0 = vector.load %arg1[%c0, %c0_0] : memref<16x48xbf16, #tpu.memory_space<vmem>>, vector<16x48xbf16>
    %c0_1 = arith.constant 0 : index
    %c0_2 = arith.constant 0 : index
    %1 = vector.load %arg2[%c0_1, %c0_2] : memref<48x128xbf16, #tpu.memory_space<vmem>>, vector<48x128xbf16>
    %c0_3 = arith.constant 0 : index
    %c0_4 = arith.constant 0 : index
    %2 = vector.load %arg3[%c0_3, %c0_4] : memref<1x128xf32, #tpu.memory_space<vmem>>, vector<1x128xf32>
    %cst = arith.constant dense<0.000000e+00> : vector<16x128xf32>
    %3 = tpu.matmul %0, %1, %cst {dimension_numbers = #tpu.dot_dimension_numbers<[1], [0], [0], [1], [0, 0, 1, 1], [], []>} : vector<16x48xbf16>, vector<48x128xbf16>, vector<16x128xf32> -> vector<16x128xf32>
    %4 = vector.broadcast %2 : vector<1x128xf32> to vector<16x128xf32>
    %5 = arith.addf %3, %4 : vector<16x128xf32>
    %cst_5 = arith.constant 0.000000e+00 : f32
    %6 = vector.broadcast %cst_5 : f32 to vector<16x128xf32>
    %7 = arith.maximumf %5, %6 : vector<16x128xf32>
    %8 = arith.truncf %7 : vector<16x128xf32> to vector<16x128xbf16>
    %c0_6 = arith.constant 0 : index
    %c0_7 = arith.constant 0 : index
    %9 = vector.load %arg4[%c0_6, %c0_7] : memref<128x64xbf16, #tpu.memory_space<vmem>>, vector<128x64xbf16>
    %c0_8 = arith.constant 0 : index
    %c0_9 = arith.constant 0 : index
    %10 = vector.load %arg5[%c0_8, %c0_9] : memref<1x64xf32, #tpu.memory_space<vmem>>, vector<1x64xf32>
    %cst_10 = arith.constant dense<0.000000e+00> : vector<16x64xf32>
    %11 = tpu.matmul %8, %9, %cst_10 {dimension_numbers = #tpu.dot_dimension_numbers<[1], [0], [0], [1], [0, 0, 1, 1], [], []>} : vector<16x128xbf16>, vector<128x64xbf16>, vector<16x64xf32> -> vector<16x64xf32>
    %12 = vector.broadcast %10 : vector<1x64xf32> to vector<16x64xf32>
    %13 = arith.addf %11, %12 : vector<16x64xf32>
    %cst_11 = arith.constant 0.000000e+00 : f32
    %14 = vector.broadcast %cst_11 : f32 to vector<16x64xf32>
    %15 = arith.maximumf %13, %14 : vector<16x64xf32>
    %16 = arith.truncf %15 : vector<16x64xf32> to vector<16x64xbf16>
    %c0_12 = arith.constant 0 : index
    %c0_13 = arith.constant 0 : index
    %17 = vector.load %arg6[%c0_12, %c0_13] : memref<64x32xbf16, #tpu.memory_space<vmem>>, vector<64x32xbf16>
    %c0_14 = arith.constant 0 : index
    %c0_15 = arith.constant 0 : index
    %18 = vector.load %arg7[%c0_14, %c0_15] : memref<1x32xf32, #tpu.memory_space<vmem>>, vector<1x32xf32>
    %cst_16 = arith.constant dense<0.000000e+00> : vector<16x32xf32>
    %19 = tpu.matmul %16, %17, %cst_16 {dimension_numbers = #tpu.dot_dimension_numbers<[1], [0], [0], [1], [0, 0, 1, 1], [], []>} : vector<16x64xbf16>, vector<64x32xbf16>, vector<16x32xf32> -> vector<16x32xf32>
    %20 = vector.broadcast %18 : vector<1x32xf32> to vector<16x32xf32>
    %21 = arith.addf %19, %20 : vector<16x32xf32>
    %cst_17 = arith.constant 0.000000e+00 : f32
    %22 = vector.broadcast %cst_17 : f32 to vector<16x32xf32>
    %23 = arith.maximumf %21, %22 : vector<16x32xf32>
    %24 = arith.truncf %23 : vector<16x32xf32> to vector<16x32xbf16>
    %c0_18 = arith.constant 0 : index
    %c0_19 = arith.constant 0 : index
    %25 = vector.load %arg8[%c0_18, %c0_19] : memref<32x16xbf16, #tpu.memory_space<vmem>>, vector<32x16xbf16>
    %c0_20 = arith.constant 0 : index
    %c0_21 = arith.constant 0 : index
    %26 = vector.load %arg9[%c0_20, %c0_21] : memref<1x16xf32, #tpu.memory_space<vmem>>, vector<1x16xf32>
    %cst_22 = arith.constant dense<0.000000e+00> : vector<16x16xf32>
    %27 = tpu.matmul %24, %25, %cst_22 {dimension_numbers = #tpu.dot_dimension_numbers<[1], [0], [0], [1], [0, 0, 1, 1], [], []>} : vector<16x32xbf16>, vector<32x16xbf16>, vector<16x16xf32> -> vector<16x16xf32>
    %28 = vector.broadcast %26 : vector<1x16xf32> to vector<16x16xf32>
    %29 = arith.addf %27, %28 : vector<16x16xf32>
    %cst_23 = arith.constant 0.000000e+00 : f32
    %30 = vector.broadcast %cst_23 : f32 to vector<16x16xf32>
    %31 = arith.maximumf %29, %30 : vector<16x16xf32>
    %32 = arith.truncf %31 : vector<16x16xf32> to vector<16x16xbf16>
    %c0_24 = arith.constant 0 : index
    %c0_25 = arith.constant 0 : index
    %33 = vector.load %arg10[%c0_24, %c0_25] : memref<16x8xbf16, #tpu.memory_space<vmem>>, vector<16x8xbf16>
    %c0_26 = arith.constant 0 : index
    %c0_27 = arith.constant 0 : index
    %34 = vector.load %arg11[%c0_26, %c0_27] : memref<1x8xf32, #tpu.memory_space<vmem>>, vector<1x8xf32>
    %cst_28 = arith.constant dense<0.000000e+00> : vector<16x8xf32>
    %35 = tpu.matmul %32, %33, %cst_28 {dimension_numbers = #tpu.dot_dimension_numbers<[1], [0], [0], [1], [0, 0, 1, 1], [], []>} : vector<16x16xbf16>, vector<16x8xbf16>, vector<16x8xf32> -> vector<16x8xf32>
    %36 = vector.broadcast %34 : vector<1x8xf32> to vector<16x8xf32>
    %37 = arith.addf %35, %36 : vector<16x8xf32>
    %cst_29 = arith.constant 0.000000e+00 : f32
    %38 = vector.broadcast %cst_29 : f32 to vector<16x8xf32>
    %39 = arith.maximumf %37, %38 : vector<16x8xf32>
    %c0_30 = arith.constant 0 : index
    %c0_31 = arith.constant 0 : index
    %40 = vector.load %arg12[%c0_30, %c0_31] : memref<1x8xbf16, #tpu.memory_space<vmem>>, vector<1x8xbf16>
    %41 = arith.extf %40 : vector<1x8xbf16> to vector<1x8xf32>
    %c0_32 = arith.constant 0 : index
    %c0_33 = arith.constant 0 : index
    %42 = vector.load %arg13[%c0_32, %c0_33] : memref<1x1xf32, #tpu.memory_space<vmem>>, vector<1x1xf32>
    %43 = vector.broadcast %41 : vector<1x8xf32> to vector<16x8xf32>
    %44 = arith.mulf %39, %43 : vector<16x8xf32>
    %cst_34 = arith.constant dense<0.000000e+00> : vector<16xf32>
    %45 = vector.multi_reduction <add>, %44, %cst_34 [1] : vector<16x8xf32> to vector<16xf32>
    %46 = vector.shape_cast %45 : vector<16xf32> to vector<16x1xf32>
    %47 = vector.broadcast %42 : vector<1x1xf32> to vector<16x1xf32>
    %48 = arith.addf %46, %47 : vector<16x1xf32>
    %49 = arith.negf %48 : vector<16x1xf32>
    %50 = math.exp %49 : vector<16x1xf32>
    %cst_35 = arith.constant 1.000000e+00 : f32
    %51 = vector.broadcast %cst_35 : f32 to vector<16x1xf32>
    %52 = arith.addf %51, %50 : vector<16x1xf32>
    %53 = arith.divf %51, %52 : vector<16x1xf32>
    %c0_36 = arith.constant 0 : index
    %c0_37 = arith.constant 0 : index
    %54 = vector.load %arg14[%c0_36, %c0_37] : memref<16x1xf32, #tpu.memory_space<vmem>>, vector<16x1xf32>
    tpu.vector_store %arg14[%c0_36, %c0_37], %53 {strides = array<i32>} : memref<16x1xf32, #tpu.memory_space<vmem>>, vector<16x1xf32>,
    return
  }
  func.func @transform_0(%arg0: i32) -> (i32, i32) {
    %c0_i32 = arith.constant 0 : i32
    %c0_i32_0 = arith.constant 0 : i32
    return %arg0, %c0_i32 : i32, i32
  }
  func.func @transform_1(%arg0: i32) -> (i32, i32) {
    %c0_i32 = arith.constant 0 : i32
    %c0_i32_0 = arith.constant 0 : i32
    %c0_i32_1 = arith.constant 0 : i32
    return %c0_i32, %c0_i32_0 : i32, i32
  }
  func.func @transform_2(%arg0: i32) -> (i32, i32) {
    %c0_i32 = arith.constant 0 : i32
    %c0_i32_0 = arith.constant 0 : i32
    %c0_i32_1 = arith.constant 0 : i32
    return %c0_i32, %c0_i32_0 : i32, i32
  }
  func.func @transform_3(%arg0: i32) -> (i32, i32) {
    %c0_i32 = arith.constant 0 : i32
    %c0_i32_0 = arith.constant 0 : i32
    %c0_i32_1 = arith.constant 0 : i32
    return %c0_i32, %c0_i32_0 : i32, i32
  }
  func.func @transform_4(%arg0: i32) -> (i32, i32) {
    %c0_i32 = arith.constant 0 : i32
    %c0_i32_0 = arith.constant 0 : i32
    %c0_i32_1 = arith.constant 0 : i32
    return %c0_i32, %c0_i32_0 : i32, i32
  }
  func.func @transform_5(%arg0: i32) -> (i32, i32) {
    %c0_i32 = arith.constant 0 : i32
    %c0_i32_0 = arith.constant 0 : i32
    %c0_i32_1 = arith.constant 0 : i32
    return %c0_i32, %c0_i32_0 : i32, i32
  }
  func.func @transform_6(%arg0: i32) -> (i32, i32) {
    %c0_i32 = arith.constant 0 : i32
    %c0_i32_0 = arith.constant 0 : i32
    %c0_i32_1 = arith.constant 0 : i32
    return %c0_i32, %c0_i32_0 : i32, i32
  }
  func.func @transform_7(%arg0: i32) -> (i32, i32) {
    %c0_i32 = arith.constant 0 : i32
    %c0_i32_0 = arith.constant 0 : i32
    %c0_i32_1 = arith.constant 0 : i32
    return %c0_i32, %c0_i32_0 : i32, i32
  }
  func.func @transform_8(%arg0: i32) -> (i32, i32) {
    %c0_i32 = arith.constant 0 : i32
    %c0_i32_0 = arith.constant 0 : i32
    %c0_i32_1 = arith.constant 0 : i32
    return %c0_i32, %c0_i32_0 : i32, i32
  }
  func.func @transform_9(%arg0: i32) -> (i32, i32) {
    %c0_i32 = arith.constant 0 : i32
    %c0_i32_0 = arith.constant 0 : i32
    %c0_i32_1 = arith.constant 0 : i32
    return %c0_i32, %c0_i32_0 : i32, i32
  }
  func.func @transform_10(%arg0: i32) -> (i32, i32) {
    %c0_i32 = arith.constant 0 : i32
    %c0_i32_0 = arith.constant 0 : i32
    %c0_i32_1 = arith.constant 0 : i32
    return %c0_i32, %c0_i32_0 : i32, i32
  }
  func.func @transform_11(%arg0: i32) -> (i32, i32) {
    %c0_i32 = arith.constant 0 : i32
    %c0_i32_0 = arith.constant 0 : i32
    %c0_i32_1 = arith.constant 0 : i32
    return %c0_i32, %c0_i32_0 : i32, i32
  }
  func.func @transform_12(%arg0: i32) -> (i32, i32) {
    %c0_i32 = arith.constant 0 : i32
    %c0_i32_0 = arith.constant 0 : i32
    %c0_i32_1 = arith.constant 0 : i32
    return %c0_i32, %c0_i32_0 : i32, i32
  }
  func.func @transform_13(%arg0: i32) -> (i32, i32) {
    %c0_i32 = arith.constant 0 : i32
    %c0_i32_0 = arith.constant 0 : i32
    return %arg0, %c0_i32 : i32, i32
  }
}

</mosaic_0001>

<bundles_post_ra>
// kernel: tpu_custom_call.1
= control target key start
LH: loop header
LB: loop body
LE: loop exit
PB: predicated region body
PF: predicated region fallthrough
CT: control target
= control target key end

     0   :  { %s1204_s27 = smov 0   ;;  %s1325_s0 = inlined_call_operand.vmem [shape: bf16[48,48], index: 0, kind: input, shape index: {}]   ;;  %s1326_s1 = inlined_call_operand.vmem [shape: bf16[48,128], index: 1, kind: input, shape index: {}]   ;;  %s1327_s2 = inlined_call_operand.vmem [shape: f32[1,128], index: 2, kind: input, shape index: {}]   ;;  %s1328_s3 = inlined_call_operand.vmem [shape: bf16[128,64], index: 3, kind: input, shape index: {}]   ;;  %s1329_s4 = inlined_call_operand.vmem [shape: f32[1,64], index: 4, kind: input, shape index: {}]   ;;  %s1330_s5 = inlined_call_operand.vmem [shape: bf16[64,32], index: 5, kind: input, shape index: {}]   ;;  %s1331_s6 = inlined_call_operand.vmem [shape: f32[1,32], index: 6, kind: input, shape index: {}]   ;;  %s1332_s7 = inlined_call_operand.vmem [shape: bf16[32,16], index: 7, kind: input, shape index: {}]   ;;  %s1333_s8 = inlined_call_operand.vmem [shape: f32[1,16], index: 8, kind: input, shape index: {}]   ;;  %s1334_s9 = inlined_call_operand.vmem [shape: bf16[16,8], index: 9, kind: input, shape index: {}]   ;;  %s1335_s10 = inlined_call_operand.vmem [shape: f32[1,8], index: 10, kind: input, shape index: {}]   ;;  %s1336_s11 = inlined_call_operand.vmem [shape: bf16[1,8], index: 11, kind: input, shape index: {}]   ;;  %s1337_s12 = inlined_call_operand.<no memory space> [shape: f32[1,1], index: 12, kind: input, shape index: {}]   ;;  %s1338_s13 = inlined_call_operand.vmem [shape: f32[48,1], index: 13, kind: output, shape index: {}]  }
   0x1   :  { %v18_v0 = vstv %s1337_s12 }
   0x2   :  { %19 = vst [vmem:[#allocation2] sm:$0x1] %v18_v0 }
   0x3 LB: > { %s963_s28 = sadd.s32 4294967295, %s1127_s27   ;;  %p967_p0 = scmp.ge.s32.totalorder %s1127_s27, 1  ;;  %s1127_s27 = sphi %s1204_s27, %s25_s27  }
   0x4   : > { %p390_p1 = scmp.lt.s32.totalorder %s1127_s27, 4 }
   0x6   : > { %p391_p2 = pnand %p967_p0, %p390_p1 }
   0x7   : > { %v1094_v1 = vld [vmem:[%s1326_s1] sm:$0xff] (!%p391_p2)   ;;  %v1129_v2 = vmov (!%p391_p2), 0.0   ;;  %v1095_v3 = vld [vmem:[%s1326_s1 + $0x8] sm:$0xff] (!%p391_p2)   ;;  %vm1130_vm0 = vmmov (!%p391_p2), 0   ;;  %s968_s15 = sshll.u32 (!%p391_p2), %s963_s28, 1  ;;  %v1096_v5 = vld [vmem:[%s1326_s1 + $0x10] sm:$0xff] (!%p391_p2)   ;;  %v871_v61 = vlaneseq (!%p391_p2) }
   0x8   : > { %394 = sbr.rel (%p391_p2) target bundleno = 1294 (0x50e), region = 72  ;;  %1028 = vmatprep.subr.bf16.mxu0 (!%p391_p2), %v1129_v2  ;;  %1038 = vmatprep.subr.bf16.mxu1 (!%p391_p2), %v1129_v2  ;;  %p435_p3 = scmp.lt.s32.totalorder (!%p391_p2), %s968_s15, 5  ;;  %v1098_v4 = vld [vmem:[%s1328_s3] sm:$0xff] (!%p391_p2)   ;;  %v1099_v6 = vld [vmem:[%s1328_s3 + $0x8] sm:$0xff] (!%p391_p2)   ;;  %vm485_vm1 = vcmask (!%p391_p2), 392192   ;;  %v1100_v8 = vld [vmem:[%s1328_s3 + $0x10] sm:$0xff] (!%p391_p2)  }
   0x9   : > { %1029 = vmatpush3.bf16.msra.mxu0 (!%p391_p2), %v1094_v1  ;;  %1034 = vmatprep.mubr.msk.bf16.mxu0 (!%p391_p2), %vm1130_vm0, %v1129_v2  ;;  %v1101_v9 = vld [vmem:[%s1328_s3 + $0x18] sm:$0xff] (!%p391_p2)   ;;  %v1102_v10 = vld [vmem:[%s1328_s3 + $0x20] sm:$0xff] (!%p391_p2)   ;;  %v1103_v11 = vld [vmem:[%s1328_s3 + $0x28] sm:$0xff] (!%p391_p2)   ;;  %vm687_vm2 = vcmask (!%p391_p2), 523264   ;;  %vm758_vm3 = vcmask (!%p391_p2), 261120   ;;  %vm821_vm4 = vcmask (!%p391_p2), 130048  }
   0xa   : > { %1030 = vmatprep.subr.bf16.mxu0 (!%p391_p2), %v1129_v2  ;;  %1054 = vmatprep.mubr.msk.bf16.mxu1 (!%p391_p2), %vm1130_vm0, %v1129_v2  ;;  %v1104_v12 = vld [vmem:[%s1328_s3 + $0x30] sm:$0xff] (!%p391_p2)   ;;  %v1105_v13 = vld [vmem:[%s1328_s3 + $0x38] sm:$0xff] (!%p391_p2)   ;;  %v1106_v14 = vld [vmem:[%s1330_s5] sm:$0xff] (!%p391_p2)   ;;  %v872_v62 = vshrl.u32 (!%p391_p2), %v871_v61, 7  ;;  %vm877_vm5 = vcmask (!%p391_p2), 64512   ;;  %vm904_vm6 = vcmask (!%p391_p2), 7168  }
   0xb   : > { %1039 = vmatpush3.bf16.msra.mxu1 (!%p391_p2), %v1098_v4  ;;  %v1107_v15 = vld [vmem:[%s1330_s5 + $0x8] sm:$0xff] (!%p391_p2)   ;;  %v972_v16 = vld [vmem:[%s1327_s2] ss:$0 sm:$0xff] (!%p391_p2)  ;;  %v1108_v26 = vld [vmem:[%s1330_s5 + $0x10] sm:$0xff] (!%p391_p2)  }
   0xc   : > { %1040 = vmatprep.subr.bf16.mxu1 (!%p391_p2), %v1129_v2  ;;  %v1109_v27 = vld [vmem:[%s1330_s5 + $0x18] sm:$0xff] (!%p391_p2)   ;;  %v978_v28 = vld [vmem:[%s1329_s4] ss:$0 sm:$0xff] (!%p391_p2)  ;;  %v1111_v39 = vld [vmem:[%s1332_s7 + $0x8] sm:$0xff] (!%p391_p2)   ;;  %v873_v1 = vsub.s32 (!%p391_p2), 0, %v872_v62 }
   0xd   : > { %1031 = vmatpush3.bf16.msra.mxu0 (!%p391_p2), %v1095_v3  ;;  %v1110_v38 = vld [vmem:[%s1332_s7] sm:$0xff] (!%p391_p2)  }
   0xe   : > { %1032 = vmatprep.subr.bf16.mxu0 (!%p391_p2), %v1129_v2  ;;  %v987_v40 = vld [vmem:[%s1331_s6] ss:$0 sm:$0xff] (!%p391_p2) }
   0xf   : > { %s1340_s15 = smov (!%p435_p3, %s968_s15), 5  ;;  %1041 = vmatpush3.bf16.msra.mxu1 %v1099_v6  ;;  %v1112_v50 = vld [vmem:[%s1334_s9] sm:$0xff]  }
  0x10   : > { %s969_s22 = sshll.u32 %s1340_s15, 2  ;;  %1042 = vmatprep.subr.bf16.mxu1 %v1129_v2  ;;  %v993_v51 = vld [vmem:[%s1333_s8] ss:$0 sm:$0xff]  ;;  %s971_s16 = sshll.u32 %s1340_s15, 3 }
  0x11   : > { %s438_s25 = scalar_lea.vmem %s1325_s0, %s969_s22  ;;  %1033 = vmatpush3.bf16.msra.mxu0 %v1096_v5  ;;  %v868_v63 = vld [vmem:[%s1336_s11] sm:$0x1]  ;;  %s444_s19 = scalar_lea.vmem %s1338_s13, %s971_s16 }
  0x12   : > { %v1097_v7 = vld [vmem:[%s438_s25] sm:$0xff]   ;;  %1058 = vmatprep.subr.bf16.mxu0 %v1129_v2  ;;  %v869_v0 = vunpack.c.l.bf16 %v868_v63 }
  0x13   : > { %1043 = vmatpush3.bf16.msra.mxu1 %v1100_v8 }
  0x14   : > { %1035 = vmatmul.mubr.msk.bf16.vlgmr.msra.gmra.mrb[0].mxu0 %vm485_vm1, %v1097_v7  ;;  %1044 = vmatprep.subr.bf16.mxu1 %v1129_v2  ;;  %v874_v6 = vrot.slane %v869_v0, %v873_v1 }
  0x15   : > { %1066 = vmatprep.mubr.msk.bf16.mxu0 %vm1130_vm0, %v1129_v2  ;;  %1059 = vmatpush3.bf16.msra.mxu0 %v1106_v14 }
  0x16   : > { %1060 = vmatprep.subr.bf16.mxu0 %v1129_v2 }
  0x17   : > { %1045 = vmatpush3.bf16.msra.mxu1 %v1101_v9 }
  0x18   : > { %1046 = vmatprep.subr.bf16.mxu1 %v1129_v2 }
  0x19   : > { %1061 = vmatpush3.bf16.msra.mxu0 %v1107_v15 }
  0x1a   : > { %1062 = vmatprep.subr.bf16.mxu0 %v1129_v2 }
  0x1b   : > { %1047 = vmatpush3.bf16.msra.mxu1 %v1102_v10 }
  0x1c   : > { %1048 = vmatprep.subr.bf16.mxu1 %v1129_v2 }
  0x1d   : > { %1063 = vmatpush3.bf16.msra.mxu0 %v1108_v26 }
  0x1e   : > { %1064 = vmatprep.subr.bf16.mxu0 %v1129_v2 }
  0x1f   : > { %1049 = vmatpush3.bf16.msra.mxu1 %v1103_v11 }
  0x20   : > { %1050 = vmatprep.subr.bf16.mxu1 %v1129_v2 }
  0x21   : > { %1065 = vmatpush3.bf16.msra.mxu0 %v1109_v27 }
  0x22   : > { %1070 = vmatprep.subr.bf16.mxu0 %v1129_v2 }
  0x23   : > { %1051 = vmatpush3.bf16.msra.mxu1 %v1104_v12 }
  0x24   : > { %1052 = vmatprep.subr.bf16.mxu1 %v1129_v2 }
  0x27   : > { %1053 = vmatpush3.bf16.msra.mxu1 %v1105_v13 }
  0x28   : > { %1078 = vmatprep.subr.bf16.mxu1 %v1129_v2 }
  0xe7   : > { %v523_v17 = vpop.f32.mrb[0].mxu0 }
  0xe8   : > { %v524_v18 = vadd.f32 %v972_v16, %v523_v17  ;;  %v1036_v19 = vpop.f32.mrb[1].mxu0 }
  0xe9   : > { %v526_v20 = vpop.f32.mrb[2].mxu0 }
  0xea   : > { %v527_v21 = vadd.f32 %v972_v16, %v526_v20  ;;  %v1037_v22 = vpop.f32.mrb[3].mxu0  ;;  %v530_v23 = vmax.f32 %v524_v18, 0.0  ;;  %v1000_v16 = vld [vmem:[#allocation2] ss:$0 sm:$0xff] }
  0xec   : > { %v531_v24 = vmax.f32 %v527_v21, 0.0 }
  0xee   : > { %v532_v25 = vpack.c.bf16 %v531_v24, %v530_v23 }
  0xf0   : > { %1055 = vmatmul.mubr.bf16.vlgmr.msra.gmra.mrb[0].mxu1 %v532_v25 }
  0xf1   : > { %1080 = vmatprep.mubr.msk.bf16.mxu1 %vm1130_vm0, %v1129_v2  ;;  %1079 = vmatpush3.bf16.msra.mxu1 %v1112_v50 }
 0x1c3   : > { %v638_v29 = vpop.f32.mrb[0].mxu1 }
 0x1c4   : > { %v639_v30 = vadd.f32 %v978_v28, %v638_v29  ;;  %v1056_v31 = vpop.f32.mrb[1].mxu1 }
 0x1c5   : > { %v641_v32 = vpop.f32.mrb[2].mxu1 }
 0x1c6   : > { %v642_v33 = vadd.f32 %v978_v28, %v641_v32  ;;  %v1057_v34 = vpop.f32.mrb[3].mxu1  ;;  %v645_v35 = vmax.f32 %v639_v30, 0.0 }
 0x1c8   : > { %v646_v36 = vmax.f32 %v642_v33, 0.0 }
 0x1ca   : > { %v647_v37 = vpack.c.bf16 %v646_v36, %v645_v35 }
 0x1cc   : > { %1067 = vmatmul.mubr.msk.bf16.vlgmr.msra.gmra.mrb[4].mxu0 %vm687_vm2, %v647_v37 }
 0x1cd   : > { %1074 = vmatprep.mubr.msk.bf16.mxu0 %vm1130_vm0, %v1129_v2  ;;  %1071 = vmatpush3.bf16.msra.mxu0 %v1110_v38 }
 0x1ce   : > { %1072 = vmatprep.subr.bf16.mxu0 %v1129_v2  ;;  %v997_v2 = vld [vmem:[%s1335_s10] ss:$0 sm:$0xff] }
 0x1d1   : > { %1073 = vmatpush3.bf16.msra.mxu0 %v1111_v39 }
 0x29f   : > { %v725_v41 = vpop.f32.mrb[4].mxu0 }
 0x2a0   : > { %v726_v42 = vadd.f32 %v987_v40, %v725_v41  ;;  %v1068_v43 = vpop.f32.mrb[5].mxu0 }
 0x2a1   : > { %v728_v44 = vpop.f32.mrb[6].mxu0 }
 0x2a2   : > { %v729_v45 = vadd.f32 %v987_v40, %v728_v44  ;;  %v1069_v46 = vpop.f32.mrb[7].mxu0  ;;  %v732_v47 = vmax.f32 %v726_v42, 0.0 }
 0x2a4   : > { %v733_v48 = vmax.f32 %v729_v45, 0.0 }
 0x2a6   : > { %v734_v49 = vpack.c.bf16 %v733_v48, %v732_v47 }
 0x2a8   : > { %1075 = vmatmul.mubr.msk.bf16.vlgmr.msra.gmra.mrb[8].mxu0 %vm758_vm3, %v734_v49 }
 0x37b   : > { %v796_v52 = vpop.f32.mrb[8].mxu0 }
 0x37c   : > { %v797_v53 = vadd.f32 %v993_v51, %v796_v52  ;;  %v1076_v54 = vpop.f32.mrb[9].mxu0 }
 0x37d   : > { %v799_v55 = vpop.f32.mrb[10].mxu0 }
 0x37e   : > { %v800_v56 = vadd.f32 %v993_v51, %v799_v55  ;;  %v1077_v57 = vpop.f32.mrb[11].mxu0  ;;  %v803_v58 = vmax.f32 %v797_v53, 0.0 }
 0x380   : > { %v804_v59 = vmax.f32 %v800_v56, 0.0 }
 0x382   : > { %v805_v60 = vpack.c.bf16 %v804_v59, %v803_v58 }
 0x384   : > { %1081 = vmatmul.mubr.msk.bf16.vlgmr.msra.gmra.mrb[4].mxu1 %vm821_vm4, %v805_v60 }
 0x457   : > { %v859_v3 = vpop.f32.mrb[4].mxu1 }
 0x458   : > { %v860_v4 = vadd.f32 %v997_v2, %v859_v3  ;;  %v1082_v5 = vpop.f32.mrb[5].mxu1 }
 0x459   : > { %v862_v7 = vpop.f32.mrb[6].mxu1 }
 0x45a   : > { %v866_v8 = vmax.f32 %v860_v4, 0.0  ;;  %v863_v9 = vadd.f32 %v997_v2, %v862_v7  ;;  %v1083_v10 = vpop.f32.mrb[7].mxu1 }
 0x45c   : > { %v867_v11 = vmax.f32 %v863_v9, 0.0  ;;  %v875_v12 = vmul.f32 %v874_v6, %v866_v8 }
 0x45e   : > { %v878_v13 = vsel %vm877_vm5, %v875_v12, 0.0  ;;  %v876_v14 = vmul.f32 %v874_v6, %v867_v11 }
 0x45f   : > { %879 = vadd.xlane.f32.xlu0 %v878_v13 }
 0x460   : > { %v881_v15 = vsel %vm877_vm5, %v876_v14, 0.0 }
 0x463   : > { %882 = vadd.xlane.f32.xlu0 %v881_v15 }
 0x4ec   : > { %v880_v17 = vpop.xlane.xlu0 %879 }
 0x4ed   : > { %v890_v18 = vadd.f32 %v1000_v16, %v880_v17 }
 0x4ef   : > { %v1001_v19 = vmul.f32 -1.442695, %v890_v18 }
 0x4f0   : > { %v883_v20 = vpop.xlane.xlu0 %882 }
 0x4f1   : > { %1113 = vpow2.f32 %v1001_v19  ;;  %v891_v21 = vadd.f32 %v1000_v16, %v883_v20 }
 0x4f3   : > { %v1002_v22 = vmul.f32 -1.442695, %v891_v21 }
 0x4f5   : > { %1115 = vpow2.f32 %v1002_v22 }
 0x4fb   : > { %v1114_v23 = vpop.eup %1113 }
 0x4fc   : > { %v898_v24 = vadd.f32 1.0, %v1114_v23 }
 0x4fe   : > { %1117 = vrcp.f32 %v898_v24 }
 0x4ff   : > { %v1116_v25 = vpop.eup %1115 }
 0x500   : > { %v899_v26 = vadd.f32 1.0, %v1116_v25 }
 0x502   : > { %1119 = vrcp.f32 %v899_v26 }
 0x508   : > { %v1118_v27 = vpop.eup %1117 }
 0x509   : > { %905 = vst.msk [vmem:[%s444_s19] sm:$0xff] %vm904_vm6, %v1118_v27 }
 0x50c   : > { %v1120_v28 = vpop.eup %1119 }
 0x50d   : > { %906 = vst.msk [vmem:[%s444_s19 + $0x8] sm:$0xff] %vm904_vm6, %v1120_v28 }
 0x50e PF: > { %s25_s27 = sadd.s32 1, %s1127_s27  }
 0x50f   : > { %p22_p4 = scmp.ge.s32.totalorder %s25_s27, 5  }
 0x511   :  { %24 = sbr.rel (!%p22_p4) target bundleno = 3 (0x3), region = 102 }

</bundles_post_ra>
